<compile_context>
chip_gen: v6e
topology: v6e:2x2x1
jax: 0.10.0
libtpu: 0.0.40
codegen_flags: <defaults>
</compile_context>

<pallas_src>
import functools

import jax
import jax.numpy as jnp
from jax.experimental import pallas as pl
from jax.experimental.pallas import tpu as pltpu


def _round_up(x, m):
    return ((x + m - 1) // m) * m


def _posemb_kernel(x_ref, w1_ref, w2_ref, b2_ref, o_ref):
    # x_ref:  (1, K_pad, tn) bf16  channel-major input tile (positions on lanes);
    #                              row C_in is all-ones, remaining rows are zero.
    # w1_ref: (F, K_pad)     bf16  BN+bias folded conv1 weight; shift in ones col.
    # w2_ref: (F, F)         bf16  second 1x1-conv weight.
    # b2_ref: (F, 1)         f32   second conv bias.
    # o_ref:  (1, F, tn)           lane-dense output tile.
    x = x_ref[0]                                         # (K_pad, tn) bf16

    # conv1 + BN + shift as one skinny (K=8) MXU matmul, f32 accumulate.
    h = jnp.dot(w1_ref[...], x, preferred_element_type=jnp.float32)   # (F, tn)
    h = jnp.maximum(h, 0.0)                              # ReLU

    # conv2 on the MXU: (F, F) @ (F, tn) -> (F, tn), bf16 inputs / f32 acc.
    y = jnp.dot(w2_ref[...], h.astype(jnp.bfloat16),
                preferred_element_type=jnp.float32)
    y = y + b2_ref[...]                                  # single fused epilogue add
    o_ref[0] = y.astype(o_ref.dtype)


@functools.partial(jax.jit, static_argnames=("tn", "out_dtype"))
def position_embedding_learned(xyz, params, *, tn=4096, out_dtype=jnp.bfloat16):
    """xyz: (B, N, C_in) -> (B, F, N) (eval-mode BatchNorm folded into conv1)."""
    B, N, C_in = xyz.shape
    F = params["w1"].shape[0]
    eps = 1e-5
    k_pad = _round_up(C_in + 1, 8)              # channels + ones row, 8-aligned

    # Fold BatchNorm (inference) and the first conv bias into W1 / one shift.
    inv_std = jax.lax.rsqrt(params["running_var"].astype(jnp.float32) + eps)
    scale = params["gamma"].astype(jnp.float32) * inv_std
    w1_f = params["w1"].astype(jnp.float32) * scale[:, None]            # (F, C_in)
    shift = (params["b1"].astype(jnp.float32) * scale
             + params["beta"].astype(jnp.float32)
             - params["running_mean"].astype(jnp.float32) * scale)      # (F,)
    # (F, K_pad): [folded channel weights | shift column | zero pad], bf16 once.
    w1_pad = jnp.concatenate(
        [w1_f, shift[:, None], jnp.zeros((F, k_pad - C_in - 1), jnp.float32)],
        axis=1).astype(jnp.bfloat16)                                    # (F, K_pad)
    w2 = params["w2"].astype(jnp.bfloat16)                              # (F, F)
    b2 = params["b2"].astype(jnp.float32)[:, None]                      # (F, 1)

    # Channel-major, 8-sublane-aligned input built with one concatenate:
    # rows 0..C_in-1 = xyz channels, row C_in = ones (carries shift), rest 0.
    x_pad = jnp.concatenate(
        [jnp.transpose(xyz, (0, 2, 1)).astype(jnp.bfloat16),
         jnp.ones((B, 1, N), jnp.bfloat16),
         jnp.zeros((B, k_pad - C_in - 1, N), jnp.bfloat16)],
        axis=1)                                                         # (B, K_pad, N)

    # Position-axis tile: lane axis, multiple of 128, as large as is useful.
    tn = min(int(tn), _round_up(N, 128))
    tn = max(128, _round_up(tn, 128))
    # v7x megacore: keep >= 2 grid steps when possible so both TCs get work.
    if B * ((N + tn - 1) // tn) < 2 and N > 128:
        tn = max(128, _round_up((N + 1) // 2, 128))
    grid = (B, pl.cdiv(N, tn))

    out = pl.pallas_call(
        _posemb_kernel,
        out_shape=jax.ShapeDtypeStruct((B, F, N), out_dtype),
        grid_spec=pltpu.PrefetchScalarGridSpec(
            num_scalar_prefetch=0,
            grid=grid,
            in_specs=[
                pl.BlockSpec((1, k_pad, tn), lambda b, i: (b, 0, i)),  # x tile
                pl.BlockSpec((F, k_pad), lambda b, i: (0, 0)),         # folded W1
                pl.BlockSpec((F, F), lambda b, i: (0, 0)),             # W2
                pl.BlockSpec((F, 1), lambda b, i: (0, 0)),             # b2
            ],
            out_specs=pl.BlockSpec((1, F, tn), lambda b, i: (b, 0, i)),
        ),
        compiler_params=pltpu.CompilerParams(
            dimension_semantics=("parallel", "parallel"),
            vmem_limit_bytes=32 * 1024 * 1024),
    )(x_pad, w1_pad, w2, b2)
    return out


def _init_params(key, input_channel, num_pos_feats):
    k1, k2, k3, k4, k5, k6, k7, k8 = jax.random.split(key, 8)
    return {
        "w1": jax.random.normal(k1, (num_pos_feats, input_channel),
                                jnp.float32) * 0.1,
        "b1": jax.random.normal(k2, (num_pos_feats,), jnp.float32) * 0.1,
        "gamma": 1.0 + 0.1 * jax.random.normal(k3, (num_pos_feats,),
                                               jnp.float32),
        "beta": 0.1 * jax.random.normal(k4, (num_pos_feats,), jnp.float32),
        "running_mean": 0.1 * jax.random.normal(k5, (num_pos_feats,),
                                                jnp.float32),
        "running_var": 0.5 + jnp.abs(
            jax.random.normal(k6, (num_pos_feats,), jnp.float32)),
        "w2": jax.random.normal(k7, (num_pos_feats, num_pos_feats),
                                jnp.float32) * 0.1,
        "b2": jax.random.normal(k8, (num_pos_feats,), jnp.float32) * 0.1,
    }


def _reference(xyz, params, eps=1e-5):
    """Pure-JAX f32 reference mirroring the PyTorch forward (eval-mode BN)."""
    h = jnp.einsum("bnc,fc->bnf", xyz, params["w1"]) + params["b1"]
    h = (h - params["running_mean"]) * jax.lax.rsqrt(
        params["running_var"] + eps) * params["gamma"] + params["beta"]
    h = jnp.maximum(h, 0.0)
    y = jnp.einsum("bnf,gf->bng", h, params["w2"]) + params["b2"]
    return jnp.transpose(y, (0, 2, 1))


if __name__ == "__main__":
    key = jax.random.PRNGKey(0)
    kx, kp = jax.random.split(key)

    B, N, C_in = 2, 200, 3       # xyz points: (B, N, 3); N not a tile multiple
    F = 32                       # num_pos_feats (small for the example)

    xyz = jax.random.normal(kx, (B, N, C_in), jnp.float32)
    params = _init_params(kp, C_in, F)
    ref = _reference(xyz, params)

    # Default fast path: bf16 MXU inputs + bf16 output (loosened tolerance).
    out_bf16 = jax.block_until_ready(position_embedding_learned(xyz, params))
    assert out_bf16.shape == (B, F, N) and out_bf16.dtype == jnp.bfloat16
    assert jnp.allclose(out_bf16.astype(jnp.float32), ref,
                        atol=5e-2, rtol=5e-2), (
        float(jnp.max(jnp.abs(out_bf16.astype(jnp.float32) - ref))))

    # f32-output path (still bf16 matmul inputs, f32 accumulation).
    out_f32 = jax.block_until_ready(
        position_embedding_learned(xyz, params, out_dtype=jnp.float32))
    assert out_f32.shape == (B, F, N) and out_f32.dtype == jnp.float32
    assert jnp.allclose(out_f32, ref, atol=3e-2, rtol=3e-2), (
        float(jnp.max(jnp.abs(out_f32 - ref))))

    print("KERNEL_OK")
</pallas_src>

<mosaic_0001>
module attributes {stable_mosaic.version = 11 : i64} {
  func.func @_posemb_kernel(%arg0: i32, %arg1: i32, %arg2: memref<1x8x256xbf16, #tpu.memory_space<vmem>>, %arg3: memref<32x8xbf16, #tpu.memory_space<vmem>>, %arg4: memref<32x32xbf16, #tpu.memory_space<vmem>>, %arg5: memref<32x1xf32, #tpu.memory_space<vmem>>, %arg6: memref<1x32x256xbf16, #tpu.memory_space<vmem>>) attributes {dimension_semantics = [#tpu.dimension_semantics<parallel>, #tpu.dimension_semantics<parallel>], iteration_bounds = array<i64: 2, 1>, scalar_prefetch = 0 : i64, scratch_operands = 0 : i64, tpu.core_type = #tpu.core_type<tc>, window_params = [{transform_indices = @transform_0, window_bounds = array<i64: 1, 8, 256>}, {pipeline_mode = #tpu.pipeline_mode<synchronous>, transform_indices = @transform_1, window_bounds = array<i64: 32, 8>}, {pipeline_mode = #tpu.pipeline_mode<synchronous>, transform_indices = @transform_2, window_bounds = array<i64: 32, 32>}, {pipeline_mode = #tpu.pipeline_mode<synchronous>, transform_indices = @transform_3, window_bounds = array<i64: 32, 1>}, {transform_indices = @transform_4, window_bounds = array<i64: 1, 32, 256>}]} {
    %c0 = arith.constant 0 : index
    %c0_0 = arith.constant 0 : index
    %c0_1 = arith.constant 0 : index
    %0 = vector.load %arg2[%c0, %c0_0, %c0_1] : memref<1x8x256xbf16, #tpu.memory_space<vmem>>, vector<1x8x256xbf16>
    %1 = vector.shape_cast %0 : vector<1x8x256xbf16> to vector<8x256xbf16>
    %c0_2 = arith.constant 0 : index
    %c0_3 = arith.constant 0 : index
    %2 = vector.load %arg3[%c0_2, %c0_3] : memref<32x8xbf16, #tpu.memory_space<vmem>>, vector<32x8xbf16>
    %cst = arith.constant dense<0.000000e+00> : vector<32x256xf32>
    %3 = tpu.matmul %2, %1, %cst {dimension_numbers = #tpu.dot_dimension_numbers<[1], [0], [0], [1], [0, 0, 1, 1], [], []>} : vector<32x8xbf16>, vector<8x256xbf16>, vector<32x256xf32> -> vector<32x256xf32>
    %cst_4 = arith.constant 0.000000e+00 : f32
    %4 = vector.broadcast %cst_4 : f32 to vector<32x256xf32>
    %5 = arith.maximumf %3, %4 : vector<32x256xf32>
    %c0_5 = arith.constant 0 : index
    %c0_6 = arith.constant 0 : index
    %6 = vector.load %arg4[%c0_5, %c0_6] : memref<32x32xbf16, #tpu.memory_space<vmem>>, vector<32x32xbf16>
    %7 = arith.truncf %5 : vector<32x256xf32> to vector<32x256xbf16>
    %cst_7 = arith.constant dense<0.000000e+00> : vector<32x256xf32>
    %8 = tpu.matmul %6, %7, %cst_7 {dimension_numbers = #tpu.dot_dimension_numbers<[1], [0], [0], [1], [0, 0, 1, 1], [], []>} : vector<32x32xbf16>, vector<32x256xbf16>, vector<32x256xf32> -> vector<32x256xf32>
    %c0_8 = arith.constant 0 : index
    %c0_9 = arith.constant 0 : index
    %9 = vector.load %arg5[%c0_8, %c0_9] : memref<32x1xf32, #tpu.memory_space<vmem>>, vector<32x1xf32>
    %10 = vector.broadcast %9 : vector<32x1xf32> to vector<32x256xf32>
    %11 = arith.addf %8, %10 : vector<32x256xf32>
    %12 = arith.truncf %11 : vector<32x256xf32> to vector<32x256xbf16>
    %c0_10 = arith.constant 0 : index
    %c0_11 = arith.constant 0 : index
    %c0_12 = arith.constant 0 : index
    %13 = vector.load %arg6[%c0_10, %c0_11, %c0_12] : memref<1x32x256xbf16, #tpu.memory_space<vmem>>, vector<1x32x256xbf16>
    %14 = vector.shape_cast %13 : vector<1x32x256xbf16> to vector<32x256xbf16>
    %15 = vector.shape_cast %12 : vector<32x256xbf16> to vector<1x32x256xbf16>
    tpu.vector_store %arg6[%c0_10, %c0_11, %c0_12], %15 {strides = array<i32>} : memref<1x32x256xbf16, #tpu.memory_space<vmem>>, vector<1x32x256xbf16>,
    return
  }
  func.func @transform_0(%arg0: i32, %arg1: i32) -> (i32, i32, i32) {
    %c0_i32 = arith.constant 0 : i32
    %c0_i32_0 = arith.constant 0 : i32
    return %arg0, %c0_i32, %arg1 : i32, i32, i32
  }
  func.func @transform_1(%arg0: i32, %arg1: i32) -> (i32, i32) {
    %c0_i32 = arith.constant 0 : i32
    %c0_i32_0 = arith.constant 0 : i32
    %c0_i32_1 = arith.constant 0 : i32
    return %c0_i32, %c0_i32_0 : i32, i32
  }
  func.func @transform_2(%arg0: i32, %arg1: i32) -> (i32, i32) {
    %c0_i32 = arith.constant 0 : i32
    %c0_i32_0 = arith.constant 0 : i32
    %c0_i32_1 = arith.constant 0 : i32
    return %c0_i32, %c0_i32_0 : i32, i32
  }
  func.func @transform_3(%arg0: i32, %arg1: i32) -> (i32, i32) {
    %c0_i32 = arith.constant 0 : i32
    %c0_i32_0 = arith.constant 0 : i32
    %c0_i32_1 = arith.constant 0 : i32
    return %c0_i32, %c0_i32_0 : i32, i32
  }
  func.func @transform_4(%arg0: i32, %arg1: i32) -> (i32, i32, i32) {
    %c0_i32 = arith.constant 0 : i32
    %c0_i32_0 = arith.constant 0 : i32
    return %arg0, %c0_i32, %arg1 : i32, i32, i32
  }
}

</mosaic_0001>

<bundles_post_ra>
// kernel: position_embedding_learned.1
= control target key start
LH: loop header
LB: loop body
LE: loop exit
PB: predicated region body
PF: predicated region fallthrough
CT: control target
= control target key end

     0   :  { %9 = vsyncpa [#allocation3], 0  ;;  %s897_s0 = inlined_call_operand.vmem [shape: bf16[2,8,200], index: 0, kind: input, shape index: {}]   ;;  %s898_s1 = inlined_call_operand.vmem [shape: bf16[32,8], index: 1, kind: input, shape index: {}]   ;;  %s899_s2 = inlined_call_operand.vmem [shape: bf16[32,32], index: 2, kind: input, shape index: {}]   ;;  %s900_s3 = inlined_call_operand.vmem [shape: f32[32,1], index: 3, kind: input, shape index: {}]   ;;  %s901_s4 = inlined_call_operand.hbm [shape: bf16[2,32,200], index: 4, kind: output, shape index: {}]  }
   0x1   :  { %11 = vsyncpa [#allocation3 + $0x1], 0  ;;  %s755_s15 = smov 0   ;;  %s757_s16 = smov 0  }
   0x2   :  { %s759_s17 = smov 0   ;;  %s761_s18 = smov 0  }
   0x3   :  { %s763_s19 = smov 0   ;;  %s765_s20 = smov 0  }
   0x4 LB: > { %s548_s21 = sadd.s32 4294967295, %s724_s20   ;;  %s549_s22 = sadd.s32 4294967294, %s724_s20   ;;  %s724_s20 = sphi %s765_s20, %s17_s20   ;;  %s720_s19 = sphi %s763_s19, %s908_s19   ;;  %s716_s18 = sphi %s761_s18, %s907_s18   ;;  %s712_s17 = sphi %s759_s17, %s906_s17   ;;  %s708_s16 = sphi %s757_s16, %s905_s16   ;;  %s704_s15 = sphi %s755_s15, %s904_s15  }
   0x5   : > { %s29_s23 = sadd.s32 1, %s720_s19  ;;  %s129_s24 = sadd.s32 1, %s712_s17 }
   0x6   : > { %p31_p0 = scmp.ge.s32.totalorder %s29_s23, 2  ;;  %p139_p1 = scmp.ne.s32.totalorder %s712_s17, %s708_s16 }
   0x7   : > { %p140_p2 = scmp.eq.s32.totalorder %s548_s21, 1  ;;  %p145_p3 = scmp.ne.s32.totalorder %s708_s16, %s704_s15 }
   0x8   : > { %s910_s23 = smov (%p31_p0, %s29_s23), 0  ;;  %p146_p5 = scmp.eq.s32.totalorder %s549_s22, 1 }
   0x9   : > { %p795_p4 = por %p140_p2, %p139_p1  ;;  %s124_s26 = ssub.s32 %s720_s19, %s910_s23 }
   0xa   : > { %p552_p6 = scmp.ge.s32.totalorder %s724_s20, 1  ;;  %p127_p7 = scmp.eq.s32.totalorder %s124_s26, 0 }
   0xb   : > { %p802_p8 = por %p146_p5, %p145_p3  ;;  %p186_p9 = scmp.lt.s32.totalorder %s724_s20, 3 }
   0xc   : > { %s808_s28 = scalar_select %p127_p7, %s712_s17, %s129_s24  }
   0xd   : > { %p187_p10 = pnand %p552_p6, %p186_p9 }
   0xe   : > { %p217_p11 = scmp.lt.s32.totalorder (!%p187_p10), %s716_s18, 1  ;;  %s213_s8 = sand.u32 (!%p187_p10), 1, %s708_s16  }
   0xf   : > { %190 = sbr.rel (%p187_p10) target bundleno = 475 (0x1db), region = 36  ;;  %s553_s9 = sshll.u32 (!%p187_p10), %s213_s8, 5 }
  0x10   : > { %s215_s10 = scalar_lea.vmem (!%p187_p10), [#allocation2], %s553_s9  ;;  %s581_s12 = sshll.u32 (!%p187_p10), %s716_s18, 9 }
  0x11   : > { %s469_s11 = sshll.u32 (!%p187_p10), %s215_s10, 4  ;;  %s848_s21 = scalar_lea.hbm (!%p187_p10), %s901_s4, %s581_s12  ;;  %s843_s11 = int_to_ptr.vmem [resolvable:$true] %s469_s11 }
  0x12   : > { %s852_s22 = scalar_lea.sflag (!%p187_p10), [#allocation3], %s213_s8  ;;  %s727_s24 = smov (!%p187_p10), [#allocation2]  }
  0x13   : > { %s652_s26 = sshll.u32 (!%p187_p10), %s727_s24, 4  ;;  %s653_s26 = int_to_ptr.vmem [resolvable:$false] %s652_s26 }
  0x14   : > { %v726_v0 = vmov 0   ;;  %s218_s29 = scalar_select %p217_p11, %s716_s18, 1  ;;  %vm255_vm0 = vcmask 1043456   ;;  %v644_v5 = vld [vmem:[%s898_s1] sm:$0xff]   ;;  %vm248_vm1 = vcmask 64512   ;;  %v645_v6 = vld [vmem:[%s898_s1 + $0x8] sm:$0xff]  }
  0x15   : > { %294 = vmatprep.mubr.bf16.mxu0 %v726_v0  ;;  %404 = vmatprep.mubr.bf16.mxu1 %v726_v0  ;;  %v331_v7 = vld [vmem:[%s900_s3] sm:$0xff]  ;;  %v333_v8 = vld [vmem:[%s900_s3 + $0x10] sm:$0xff]  ;;  %v332_v9 = vld [vmem:[%s900_s3 + $0x8] sm:$0xff]  ;;  %vm365_vm2 = vcmask 261120   ;;  %s648_s18 = scalar_lea.vmem %s843_s11, 512  ;;  %p655_p1 = scmp.lt.s32.totalorder %s843_s11, %s653_s26 }
  0x16   : > { %640 = vset.pattern.permute.xlu0 %v726_v0  ;;  %641 = vset.pattern.permute.xlu1 %v726_v0  ;;  %s576_s30 = sshll.u32 %s218_s29, 3  ;;  %v334_v10 = vld [vmem:[%s900_s3 + $0x18] sm:$0xff]  ;;  %v646_v31 = vld [vmem:[%s899_s2] sm:$0xff]   ;;  %v647_v32 = vld [vmem:[%s899_s2 + $0x8] sm:$0xff]   ;;  %p649_p12 = scmp.ne.s32.totalorder %s843_s11, %s648_s18 }
  0x17   : > { %s224_s7 = scalar_lea.vmem %s897_s0, %s576_s30  ;;  %337 = vperm.xlu0 %640, %v331_v7   ;;  %347 = vperm.xlu1 %641, %v333_v8   ;;  %s654_s29 = scalar_lea.vmem %s653_s26, 1024 }
  0x18   : > { %v228_v1 = vld [vmem:[%s224_s7] sm:$0xff]  ;;  %p650_p13 = pnand %p649_p12, %p795_p4  ;;  %p656_p2 = scmp.lt.s32.totalorder %s654_s29, %s648_s18 }
  0x19   : > { %v559_v2 = vcombine.high %v228_v1, %v228_v1  ;;  %v558_v3 = vcombine.low %v228_v1, %v228_v1 }
  0x1a   : > { %p651_p0 = pneg %p650_p13  ;;  %p657_p3 = por %p656_p2, %p655_p1 }
  0x1b   : > { %560 = vmatprep.subr.msk.bf16.mxu0 %vm255_vm0, %v559_v2  ;;  %v257_v4 = vsel %vm255_vm0, %v558_v3, 0  ;;  %342 = vperm.xlu0 %640, %v332_v9  }
  0x1c   : > { %277 = vmatpush1.bf16.msra.mxu0 %v257_v4  ;;  %352 = vperm.xlu1 %641, %v334_v10   ;;  %p658_p5 = pnand %p657_p3, %p651_p0 }
  0x1f   : > { %561 = vmatmul.mubr.msk.bf16.vlgmr.msra.gmra.mxu0 %vm248_vm1, %v644_v5 }
  0x20   : > { %304 = vmatprep.mubr.bf16.mxu0 %v726_v0 }
  0x27   : > { %562 = vmatmul.mubr.msk.bf16.gmra.mxu0 %vm248_vm1, %v645_v6 }
  0x92   : > { %v338_v33 = vpop.permute.xlu0 %337  ;;  %v348_v44 = vpop.permute.xlu1 %347 }
  0x96   : > { %v343_v38 = vpop.permute.xlu0 %342 }
  0x97   : > { %v353_v52 = vpop.permute.xlu1 %352 }
  0xdf   : > { %v296_v11 = vpop.f32.mrf.mxu0 }
  0xe0   : > { %v315_v29 = vmax.f32 %v296_v11, 0.0 }
  0xe1   : > { %v298_v12 = vpop.f32.mrf.mxu0 }
  0xe2   : > { %v316_v24 = vmax.f32 %v298_v12, 0.0 }
  0xe3   : > { %v300_v13 = vpop.f32.mrf.mxu0 }
  0xe4   : > { %v317_v26 = vmax.f32 %v300_v13, 0.0 }
  0xe5   : > { %v302_v14 = vpop.f32.mrf.mxu0 }
  0xe6   : > { %v318_v20 = vmax.f32 %v302_v14, 0.0  ;;  %v327_v30 = vpack.c.bf16 %v317_v26, %v315_v29 }
  0xe7   : > { %v306_v15 = vpop.f32.mrf.mxu0 }
  0xe8   : > { %v319_v23 = vmax.f32 %v306_v15, 0.0  ;;  %v328_v28 = vpack.c.bf16 %v318_v20, %v316_v24 }
  0xe9   : > { %v308_v16 = vpop.f32.mrf.mxu0 }
  0xea   : > { %v320_v21 = vmax.f32 %v308_v16, 0.0 }
  0xeb   : > { %v310_v17 = vpop.f32.mrf.mxu0 }
  0xec   : > { %v321_v18 = vmax.f32 %v310_v17, 0.0 }
  0xed   : > { %v312_v19 = vpop.f32.mrf.mxu0 }
  0xee   : > { %v322_v22 = vmax.f32 %v312_v19, 0.0  ;;  %v329_v27 = vpack.c.bf16 %v321_v18, %v319_v23 }
  0xf0   : > { %v330_v25 = vpack.c.bf16 %v322_v22, %v320_v21 }
  0xf2   : > { %384 = vmatprep.subr.bf16.mxu1 %v330_v25 }
  0xf3   : > { %385 = vmatpush1.bf16.msra.mxu1 %v329_v27 }
  0xf4   : > { %386 = vmatprep.subr.bf16.mxu1 %v328_v28 }
  0xf7   : > { %387 = vmatpush1.bf16.msra.mxu1 %v327_v30 }
  0xfa   : > { %565 = vmatmul.mubr.msk.bf16.vlgmr.msra.gmra.mxu1 %vm365_vm2, %v646_v31 }
  0xfb   : > { %414 = vmatprep.mubr.bf16.mxu1 %v726_v0 }
 0x102   : > { %566 = vmatmul.mubr.msk.bf16.gmra.mxu1 %vm365_vm2, %v647_v32 }
 0x1ba   : > { %v406_v34 = vpop.f32.mrf.mxu1 }
 0x1bb   : > { %v407_v36 = vadd.f32 %v406_v34, %v338_v33 }
 0x1bc   : > { %v408_v35 = vpop.f32.mrf.mxu1 }
 0x1bd   : > { %v409_v37 = vadd.f32 %v408_v35, %v338_v33 }
 0x1be   : > { %v410_v39 = vpop.f32.mrf.mxu1 }
 0x1bf   : > { %v577_v40 = vpack.c.bf16 %v409_v37, %v407_v36  ;;  %v411_v42 = vadd.f32 %v410_v39, %v343_v38 }
 0x1c0   : > { %v412_v41 = vpop.f32.mrf.mxu1 }
 0x1c1   : > { %449 = vst [vmem:[%s215_s10] sm:$0xff] %v577_v40  ;;  %v413_v43 = vadd.f32 %v412_v41, %v343_v38 }
 0x1c2   : > { %v416_v45 = vpop.f32.mrf.mxu1 }
 0x1c3   : > { %v578_v46 = vpack.c.bf16 %v413_v43, %v411_v42  ;;  %v417_v48 = vadd.f32 %v416_v45, %v348_v44 }
 0x1c4   : > { %v418_v47 = vpop.f32.mrf.mxu1 }
 0x1c5   : > { %450 = vst [vmem:[%s215_s10 + $0x8] sm:$0xff] %v578_v46  ;;  %v419_v49 = vadd.f32 %v418_v47, %v348_v44 }
 0x1c6   : > { %v420_v50 = vpop.f32.mrf.mxu1 }
 0x1c7   : > { %v579_v51 = vpack.c.bf16 %v419_v49, %v417_v48  ;;  %v421_v54 = vadd.f32 %v420_v50, %v353_v52 }
 0x1c8   : > { %v422_v53 = vpop.f32.mrf.mxu1 }
 0x1c9   : > { %451 = vst [vmem:[%s215_s10 + $0x10] sm:$0xff] %v579_v51  ;;  %v423_v55 = vadd.f32 %v422_v53, %v353_v52 }
 0x1cb   : > { %v580_v56 = vpack.c.bf16 %v423_v55, %v421_v54 }
 0x1cd   : > { %452 = vst [vmem:[%s215_s10 + $0x18] sm:$0xff] %v580_v56 }
 0x1ce   : > { %661 = shalt.err (!%p658_p5)
}
 0x1cf   : > { %s662_s30 = scalar_lea.hbm %s848_s21, 512  ;;  %s666_s7 = scalar_lea.hbm %s901_s4, 1024 }
 0x1d0   : > { %p663_p6 = scmp.ne.s32.totalorder %s848_s21, %s662_s30  ;;  %p667_p10 = scmp.lt.s32.totalorder %s848_s21, %s901_s4 }
 0x1d1   : > { %p668_p11 = scmp.lt.s32.totalorder %s666_s7, %s662_s30 }
 0x1d2   : > { %p664_p7 = pnand %p663_p6, %p795_p4 }
 0x1d3   : > { %p669_p12 = por %p668_p11, %p667_p10 }
 0x1d4   : > { %p665_p9 = pneg %p664_p7 }
 0x1d6   : > { %p670_p13 = pnand %p669_p12, %p665_p9 }
 0x1d8   : > { %673 = shalt.err (!%p670_p13)
}
 0x1d9   : > { %s728_s10 = smov 128   ;;  %s729_s12 = smov 8  }
 0x1da   : > { %582 = dma.vmem_to_hbm [thread:$0]  (%p795_p4), %s843_s11, 512, %s848_s21, %s852_s22, %s728_s10, %s728_s10, %s729_s12  }
 0x1db PF: > { %p588_p0 = scmp.ge.s32.totalorder %s724_s20, 2  ;;  %s484_s13 = sand.u32 1, %s704_s15  }
 0x1dc   : > { %s485_s14 = scalar_lea.sflag [#allocation3], %s484_s13 }
 0x1dd   : > { %p585_p1 = pnand %p588_p0, %p802_p8 }
 0x1df   : > { %p586_p2 = pneg %p585_p1 }
 0x1e1   : > { %699 = dma.done.wait (%p586_p2), %s485_s14, 512  }
 0x1e2   : > { %701 = vsyncadd (%p586_p2), %s485_s14, 4294966784  ;;  %s17_s20 = sadd.s32 1, %s724_s20   ;;  %s904_s15 = smov %s708_s16 }
 0x1e3   : > { %p14_p3 = scmp.ge.s32.totalorder %s17_s20, 4   ;;  %s905_s16 = smov %s712_s17 }
 0x1e4   : > { %s906_s17 = smov %s808_s28  ;;  %s907_s18 = smov %s720_s19 }
 0x1e5   : > { %s908_s19 = smov %s910_s23  ;;  %16 = sbr.rel (!%p14_p3) target bundleno = 4 (0x4), region = 71 }
 0x1ea   :  { %490 = vsyncpa [#allocation3], 1 }
 0x1eb   :  { %492 = vsyncpa [#allocation3 + $0x1], 1 }

</bundles_post_ra>
